<compile_context>
chip_gen: v6e
topology: v6e:2x2x1
jax: 0.10.0
libtpu: 0.0.40
codegen_flags: <defaults>
</compile_context>

<pallas_src>
import functools

import jax
import jax.numpy as jnp
from jax import lax
from jax.experimental import pallas as pl
from jax.experimental.pallas import tpu as pltpu


# ------------------------------ fused kernel --------------------------------

def _fused_kernel(patch_ref, wc_ref, lw_ref, lb_ref, pool_ref, o_ref):
    # patch_ref: (KC+1, NL) f32  im2col patches, last row = 1.0 (conv bias)
    # wc_ref:    (Cmax, KC+1) f32 conv weight with bias folded into last column
    # lw_ref:    (F, Cmax)  f32  linear weight, inactive columns zeroed
    # lb_ref:    (F, 1)     f32  linear bias
    # pool_ref:  (NL, N)    f32  block-diagonal average-pool matrix (1/(H*W))
    # o_ref:     (F, N)     f32
    # conv + bias in ONE MXU matmul (K = C*KH*KW + 1)
    h = jnp.dot(wc_ref[...], patch_ref[...],
                preferred_element_type=jnp.float32)          # (Cmax, NL)
    h = jnp.maximum(h, 0.0)                                  # ReLU (VPU, f32)
    # global average pool as an MXU matmul against the block-diagonal matrix
    pooled = jnp.dot(h, pool_ref[...],
                     preferred_element_type=jnp.float32)     # (Cmax, N)
    # elastic linear head (inactive input columns already zeroed in lw)
    out = jnp.dot(lw_ref[...], pooled,
                  preferred_element_type=jnp.float32) + lb_ref[...]   # (F, N)
    o_ref[...] = out.astype(o_ref.dtype)


# ----------------------------- SuperNet forward ------------------------------

def supernet_forward(x, params, active_width):
    """x: (N, C_in, H, W) NCHW, matching PyTorch semantics."""
    conv_w = params["conv_w"].astype(jnp.float32)   # (Cmax, C, 3, 3)
    conv_b = params["conv_b"].astype(jnp.float32)   # (Cmax,)
    lin_w = params["lin_w"].astype(jnp.float32)     # (F, Cmax)
    lin_b = params["lin_b"].astype(jnp.float32)     # (F,)

    N, C, H, W = x.shape
    Cmax, _, KH, KW = conv_w.shape
    F = lin_w.shape[0]
    L = H * W                     # output positions per image ('SAME' conv)
    NL = N * L                    # batch packed along the lane axis
    KC = C * KH * KW              # im2col contraction depth

    # --- wrapper-side im2col (layout plumbing, not compute hoisting) ---------
    xp = jnp.pad(x.astype(jnp.float32), ((0, 0), (0, 0), (1, 1), (1, 1)))
    # (N, C, KH*KW, H, W) with tap index ki*KW + kj
    patches = jnp.stack(
        [xp[:, :, ki:ki + H, kj:kj + W] for ki in range(KH) for kj in range(KW)],
        axis=2)
    patches = patches.reshape(N, KC, L)                       # (c*9 + ki*3 + kj)
    patch_mat = jnp.transpose(patches, (1, 0, 2)).reshape(KC, NL)
    # fold the conv bias in via a trailing ones-row
    patch_aug = jnp.concatenate(
        [patch_mat, jnp.ones((1, NL), jnp.float32)], axis=0)  # (KC+1, NL)

    # conv weights (full max width -> stable layout across sampled widths)
    w_mat = conv_w.reshape(Cmax, KC)                          # (c, ki, kj) order
    wc = jnp.concatenate([w_mat, conv_b.reshape(Cmax, 1)], axis=1)  # (Cmax, KC+1)

    # elastic slicing (sampled StructConfig width): zero-mask the bound Linear's
    # input columns >= active_width -- numerically identical to slicing both the
    # conv output channels and the linear input features.
    col = jnp.arange(Cmax)
    lw_m = jnp.where(col[None, :] < active_width, lin_w, 0.0)  # (F, Cmax)
    lb = lin_b.reshape(F, 1)

    # block-diagonal average-pool matrix: pool_mat[p, n] = 1/(H*W) iff p in image n
    img_of_pos = jnp.arange(NL) // L
    pool_mat = (img_of_pos[:, None] == jnp.arange(N)[None, :]).astype(
        jnp.float32) / float(H * W)                            # (NL, N)

    vmem = pl.BlockSpec(memory_space=pltpu.MemorySpace.VMEM)
    out = pl.pallas_call(
        _fused_kernel,
        out_shape=jax.ShapeDtypeStruct((F, N), jnp.float32),
        in_specs=[vmem, vmem, vmem, vmem, vmem],
        out_specs=vmem,
    )(patch_aug, wc, lw_m, lb, pool_mat)

    return out.T                                               # (N, F)


# ----------------------------- reference (pure JAX) --------------------------

def supernet_reference(x, params, active_width):
    conv_w, conv_b, lin_w, lin_b = (
        params["conv_w"], params["conv_b"], params["lin_w"], params["lin_b"]
    )
    w_act = conv_w[:active_width]
    b_act = conv_b[:active_width]
    y = lax.conv_general_dilated(
        x, w_act, window_strides=(1, 1), padding="SAME",
        dimension_numbers=("NCHW", "OIHW", "NCHW"),
    ) + b_act[None, :, None, None]
    y = jnp.maximum(y, 0.0)
    pooled = jnp.mean(y, axis=(2, 3))                  # (N, active_width)
    return pooled @ lin_w[:, :active_width].T + lin_b[None, :]


# ---------------------------------- main -------------------------------------

if __name__ == "__main__":
    key = jax.random.PRNGKey(0)
    k0, k1, k2, k3, k4 = jax.random.split(key, 5)

    N, C_in, H, W = 2, 4, 16, 16
    C_out_max, F_out = 8, 10

    x = jax.random.normal(k0, (N, C_in, H, W), dtype=jnp.float32)
    params = {
        "conv_w": jax.random.normal(k1, (C_out_max, C_in, 3, 3), jnp.float32) * 0.1,
        "conv_b": jax.random.normal(k2, (C_out_max,), jnp.float32) * 0.1,
        "lin_w": jax.random.normal(k3, (F_out, C_out_max), jnp.float32) * 0.1,
        "lin_b": jax.random.normal(k4, (F_out,), jnp.float32) * 0.1,
    }

    # Deterministic sample from SearchSpace {'Conv2d': {'width': [4, 8]}}.
    active_width = 4

    fwd = jax.jit(functools.partial(supernet_forward, active_width=active_width))
    out = fwd(x, params)
    jax.block_until_ready(out)

    ref = supernet_reference(x, params, active_width)
    assert out.shape == (N, F_out)
    max_err = float(jnp.max(jnp.abs(out - ref)))
    # all-f32 MXU matmuls -> tight tolerance
    assert max_err < 1e-4, f"max abs err = {max_err}"

    # TODO(synk): SuperNet's search-space bookkeeping (sample/shrink/export,
    # binding-layer propagation) is host-side Python control flow with no
    # kernel-level compute; only the forward math of the wrapped elastic model
    # is expressed in Pallas (elastic width enters as the zero-mask on lw_m).
    print("KERNEL_OK")
</pallas_src>

<mosaic_0001>
module attributes {stable_mosaic.version = 11 : i64} {
  func.func @_fused_kernel(%arg0: memref<37x512xf32, #tpu.memory_space<vmem>>, %arg1: memref<8x37xf32, #tpu.memory_space<vmem>>, %arg2: memref<10x8xf32, #tpu.memory_space<vmem>>, %arg3: memref<10x1xf32, #tpu.memory_space<vmem>>, %arg4: memref<512x2xf32, #tpu.memory_space<vmem>>, %arg5: memref<10x2xf32, #tpu.memory_space<vmem>>) attributes {dimension_semantics = [], scalar_prefetch = 0 : i64, scratch_operands = 0 : i64, tpu.core_type = #tpu.core_type<tc>} {
    %c0 = arith.constant 0 : index
    %c0_0 = arith.constant 0 : index
    %0 = vector.load %arg1[%c0, %c0_0] : memref<8x37xf32, #tpu.memory_space<vmem>>, vector<8x37xf32>
    %c0_1 = arith.constant 0 : index
    %c0_2 = arith.constant 0 : index
    %1 = vector.load %arg0[%c0_1, %c0_2] : memref<37x512xf32, #tpu.memory_space<vmem>>, vector<37x512xf32>
    %cst = arith.constant dense<0.000000e+00> : vector<8x512xf32>
    %2 = tpu.matmul %0, %1, %cst {dimension_numbers = #tpu.dot_dimension_numbers<[1], [0], [0], [1], [0, 0, 1, 1], [], []>} : vector<8x37xf32>, vector<37x512xf32>, vector<8x512xf32> -> vector<8x512xf32>
    %cst_3 = arith.constant 0.000000e+00 : f32
    %3 = vector.broadcast %cst_3 : f32 to vector<8x512xf32>
    %4 = arith.maximumf %2, %3 : vector<8x512xf32>
    %c0_4 = arith.constant 0 : index
    %c0_5 = arith.constant 0 : index
    %5 = vector.load %arg4[%c0_4, %c0_5] : memref<512x2xf32, #tpu.memory_space<vmem>>, vector<512x2xf32>
    %cst_6 = arith.constant dense<0.000000e+00> : vector<8x2xf32>
    %6 = tpu.matmul %4, %5, %cst_6 {dimension_numbers = #tpu.dot_dimension_numbers<[1], [0], [0], [1], [0, 0, 1, 1], [], []>} : vector<8x512xf32>, vector<512x2xf32>, vector<8x2xf32> -> vector<8x2xf32>
    %c0_7 = arith.constant 0 : index
    %c0_8 = arith.constant 0 : index
    %7 = vector.load %arg2[%c0_7, %c0_8] : memref<10x8xf32, #tpu.memory_space<vmem>>, vector<10x8xf32>
    %cst_9 = arith.constant dense<0.000000e+00> : vector<10x2xf32>
    %8 = tpu.matmul %7, %6, %cst_9 {dimension_numbers = #tpu.dot_dimension_numbers<[1], [0], [0], [1], [0, 0, 1, 1], [], []>} : vector<10x8xf32>, vector<8x2xf32>, vector<10x2xf32> -> vector<10x2xf32>
    %c0_10 = arith.constant 0 : index
    %c0_11 = arith.constant 0 : index
    %9 = vector.load %arg3[%c0_10, %c0_11] : memref<10x1xf32, #tpu.memory_space<vmem>>, vector<10x1xf32>
    %10 = vector.broadcast %9 : vector<10x1xf32> to vector<10x2xf32>
    %11 = arith.addf %8, %10 : vector<10x2xf32>
    %c0_12 = arith.constant 0 : index
    %c0_13 = arith.constant 0 : index
    %12 = vector.load %arg5[%c0_12, %c0_13] : memref<10x2xf32, #tpu.memory_space<vmem>>, vector<10x2xf32>
    tpu.vector_store %arg5[%c0_12, %c0_13], %11 {strides = array<i32>} : memref<10x2xf32, #tpu.memory_space<vmem>>, vector<10x2xf32>,
    return
  }
}

</mosaic_0001>

<bundles_post_ra>
// kernel: supernet_forward.1
= control target key start
LH: loop header
LB: loop body
LE: loop exit
PB: predicated region body
PF: predicated region fallthrough
CT: control target
= control target key end

     0   :  { %vm45_vm0 = vcmask 1044480   ;;  %v601_v3 = vmov 0.0   ;;  %vm41_vm1 = vcmask 302080   ;;  %vm422_vm2 = vcmask 64512   ;;  %s908_s0 = inlined_call_operand.vmem [shape: f32[37,512], index: 0, kind: input, shape index: {}]   ;;  %s909_s1 = inlined_call_operand.vmem [shape: f32[8,37], index: 1, kind: input, shape index: {}]   ;;  %s910_s4 = inlined_call_operand.vmem [shape: f32[512,2], index: 4, kind: input, shape index: {}]   ;;  %s911_s2 = inlined_call_operand.vmem [shape: f32[10,8], index: 2, kind: input, shape index: {}]   ;;  %s912_s3 = inlined_call_operand.vmem [shape: f32[10,1], index: 3, kind: input, shape index: {}]   ;;  %s913_s5 = inlined_call_operand.vmem [shape: f32[10,2], index: 5, kind: output, shape index: {}]  }
   0x1   :  { %v38_v0 = vld [vmem:[%s908_s0 + $0x88] sm:$0x1f]  ;;  %v40_v1 = vld [vmem:[%s908_s0 + $0x98] sm:$0x1f]  ;;  %v37_v2 = vld [vmem:[%s908_s0 + $0x80] sm:$0x1f]  ;;  %122 = vmatprep.mubr.f32.mxu0 %v601_v3  ;;  %193 = vmatprep.mubr.f32.mxu1 %v601_v3 }
   0x2   :  { %512 = vmatprep.subr.msk.mxu0 %vm45_vm0, %v38_v0  ;;  %515 = vmatprep.subr.msk.mxu1 %vm45_vm0, %v40_v1  ;;  %v39_v4 = vld [vmem:[%s908_s0 + $0x90] sm:$0x1f]  ;;  %v34_v5 = vld [vmem:[%s908_s0 + $0x68] sm:$0xff]  ;;  %v36_v6 = vld [vmem:[%s908_s0 + $0x78] sm:$0xff]  ;;  %vm506_vm3 = vcmask 9216   ;;  %vm504_vm4 = vcmask 15360  }
   0x3   :  { %513 = vmatpush1.msk.msra.mxu0 %vm45_vm0, %v37_v2  ;;  %516 = vmatpush1.msk.msra.mxu1 %vm45_vm0, %v39_v4  ;;  %v33_v7 = vld [vmem:[%s908_s0 + $0x60] sm:$0xff]  ;;  %v35_v8 = vld [vmem:[%s908_s0 + $0x70] sm:$0xff]  ;;  %v30_v9 = vld [vmem:[%s908_s0 + $0x48] sm:$0xff] }
   0x4   :  { %82 = vmatprep.subr.mxu0 %v34_v5  ;;  %153 = vmatprep.subr.mxu1 %v36_v6  ;;  %v32_v10 = vld [vmem:[%s908_s0 + $0x58] sm:$0xff]  ;;  %v29_v11 = vld [vmem:[%s908_s0 + $0x40] sm:$0xff]  ;;  %v31_v12 = vld [vmem:[%s908_s0 + $0x50] sm:$0xff] }
   0x5   :  { %83 = vmatpush1.msra.mxu0 %v33_v7  ;;  %154 = vmatpush1.msra.mxu1 %v35_v8  ;;  %v26_v13 = vld [vmem:[%s908_s0 + $0x28] sm:$0xff]  ;;  %v28_v14 = vld [vmem:[%s908_s0 + $0x38] sm:$0xff]  ;;  %v25_v15 = vld [vmem:[%s908_s0 + $0x20] sm:$0xff] }
   0x6   :  { %84 = vmatprep.subr.mxu0 %v30_v9  ;;  %155 = vmatprep.subr.mxu1 %v32_v10  ;;  %v27_v16 = vld [vmem:[%s908_s0 + $0x30] sm:$0xff]  ;;  %v22_v17 = vld [vmem:[%s908_s0 + $0x8] sm:$0xff]  ;;  %v24_v18 = vld [vmem:[%s908_s0 + $0x18] sm:$0xff] }
   0x7   :  { %85 = vmatpush1.msra.mxu0 %v29_v11  ;;  %156 = vmatpush1.msra.mxu1 %v31_v12  ;;  %v21_v19 = vld [vmem:[%s908_s0] sm:$0xff]  ;;  %v23_v20 = vld [vmem:[%s908_s0 + $0x10] sm:$0xff]  ;;  %v235_v22 = vld [vmem:[%s910_s4 + $0xf8] sm:$0xff] }
   0x8   :  { %86 = vmatprep.subr.mxu0 %v26_v13  ;;  %157 = vmatprep.subr.mxu1 %v28_v14  ;;  %v20_v21 = vld [vmem:[%s909_s1] sm:$0xff]  ;;  %v267_v23 = vld [vmem:[%s910_s4 + $0x1f8] sm:$0xff]  ;;  %v234_v26 = vld [vmem:[%s910_s4 + $0xf0] sm:$0xff] }
   0x9   :  { %87 = vmatpush1.msra.mxu0 %v25_v15  ;;  %158 = vmatpush1.msra.mxu1 %v27_v16  ;;  %v219_v24 = vld [vmem:[%s910_s4 + $0x78] sm:$0xff]  ;;  %v266_v27 = vld [vmem:[%s910_s4 + $0x1f0] sm:$0xff]  ;;  %v233_v30 = vld [vmem:[%s910_s4 + $0xe8] sm:$0xff] }
   0xa   :  { %88 = vmatprep.subr.mxu0 %v22_v17  ;;  %159 = vmatprep.subr.mxu1 %v24_v18  ;;  %v251_v25 = vld [vmem:[%s910_s4 + $0x178] sm:$0xff]  ;;  %v218_v28 = vld [vmem:[%s910_s4 + $0x70] sm:$0xff]  ;;  %v265_v31 = vld [vmem:[%s910_s4 + $0x1e8] sm:$0xff] }
   0xb   :  { %89 = vmatpush1.msra.mxu0 %v21_v19  ;;  %160 = vmatpush1.msra.mxu1 %v23_v20  ;;  %v250_v29 = vld [vmem:[%s910_s4 + $0x170] sm:$0xff]  ;;  %v217_v32 = vld [vmem:[%s910_s4 + $0x68] sm:$0xff]  ;;  %v232_v34 = vld [vmem:[%s910_s4 + $0xe0] sm:$0xff] }
   0xc   :  { %514 = vmatmul.mubr.msk.f32.vlgmr.msra.gmra.mxu0 %vm41_vm1, %v20_v21  ;;  %517 = vmatmul.mubr.msk.f32.vlgmr.msra.gmra.mxu1 %vm41_vm1, %v20_v21  ;;  %v249_v33 = vld [vmem:[%s910_s4 + $0x168] sm:$0xff]  ;;  %v264_v35 = vld [vmem:[%s910_s4 + $0x1e0] sm:$0xff]  ;;  %v231_v38 = vld [vmem:[%s910_s4 + $0xd8] sm:$0xff] }
   0xd   :  { %520 = vmatprep.subr.mxu0 %v235_v22  ;;  %555 = vmatprep.subr.mxu1 %v267_v23  ;;  %v216_v36 = vld [vmem:[%s910_s4 + $0x60] sm:$0xff]  ;;  %v263_v39 = vld [vmem:[%s910_s4 + $0x1d8] sm:$0xff]  ;;  %v230_v42 = vld [vmem:[%s910_s4 + $0xd0] sm:$0xff] }
   0xe   :  { %521 = vmatpush3.msra.mxu0 %v219_v24  ;;  %556 = vmatpush3.msra.mxu1 %v251_v25  ;;  %v248_v37 = vld [vmem:[%s910_s4 + $0x160] sm:$0xff]  ;;  %v215_v40 = vld [vmem:[%s910_s4 + $0x58] sm:$0xff]  ;;  %v262_v43 = vld [vmem:[%s910_s4 + $0x1d0] sm:$0xff] }
   0xf   :  { %522 = vmatprep.subr.mxu0 %v234_v26  ;;  %557 = vmatprep.subr.mxu1 %v266_v27  ;;  %v247_v41 = vld [vmem:[%s910_s4 + $0x158] sm:$0xff]  ;;  %v214_v44 = vld [vmem:[%s910_s4 + $0x50] sm:$0xff]  ;;  %v229_v46 = vld [vmem:[%s910_s4 + $0xc8] sm:$0xff] }
  0x10   :  { %523 = vmatpush3.msra.mxu0 %v218_v28  ;;  %558 = vmatpush3.msra.mxu1 %v250_v29  ;;  %v246_v45 = vld [vmem:[%s910_s4 + $0x150] sm:$0xff]  ;;  %v261_v47 = vld [vmem:[%s910_s4 + $0x1c8] sm:$0xff]  ;;  %v228_v50 = vld [vmem:[%s910_s4 + $0xc0] sm:$0xff] }
  0x11   :  { %524 = vmatprep.subr.mxu0 %v233_v30  ;;  %559 = vmatprep.subr.mxu1 %v265_v31  ;;  %v213_v48 = vld [vmem:[%s910_s4 + $0x48] sm:$0xff]  ;;  %v260_v51 = vld [vmem:[%s910_s4 + $0x1c0] sm:$0xff]  ;;  %v227_v54 = vld [vmem:[%s910_s4 + $0xb8] sm:$0xff]  ;;  %v602_v31 = vmov 0  }
  0x12   :  { %525 = vmatpush3.msra.mxu0 %v217_v32  ;;  %560 = vmatpush3.msra.mxu1 %v249_v33  ;;  %v245_v49 = vld [vmem:[%s910_s4 + $0x148] sm:$0xff]  ;;  %v212_v52 = vld [vmem:[%s910_s4 + $0x40] sm:$0xff]  ;;  %v259_v55 = vld [vmem:[%s910_s4 + $0x1b8] sm:$0xff] }
  0x13   :  { %526 = vmatprep.subr.mxu0 %v232_v34  ;;  %561 = vmatprep.subr.mxu1 %v264_v35  ;;  %v244_v53 = vld [vmem:[%s910_s4 + $0x140] sm:$0xff]  ;;  %v211_v56 = vld [vmem:[%s910_s4 + $0x38] sm:$0xff]  ;;  %v226_v58 = vld [vmem:[%s910_s4 + $0xb0] sm:$0xff] }
  0x14   :  { %527 = vmatpush3.msra.mxu0 %v216_v36  ;;  %562 = vmatpush3.msra.mxu1 %v248_v37  ;;  %v243_v57 = vld [vmem:[%s910_s4 + $0x138] sm:$0xff]  ;;  %v258_v59 = vld [vmem:[%s910_s4 + $0x1b0] sm:$0xff]  ;;  %v225_v62 = vld [vmem:[%s910_s4 + $0xa8] sm:$0xff] }
  0x15   :  { %528 = vmatprep.subr.mxu0 %v231_v38  ;;  %563 = vmatprep.subr.mxu1 %v263_v39  ;;  %v210_v60 = vld [vmem:[%s910_s4 + $0x30] sm:$0xff]  ;;  %v257_v63 = vld [vmem:[%s910_s4 + $0x1a8] sm:$0xff]  ;;  %v224_v2 = vld [vmem:[%s910_s4 + $0xa0] sm:$0xff] }
  0x16   :  { %529 = vmatpush3.msra.mxu0 %v215_v40  ;;  %564 = vmatpush3.msra.mxu1 %v247_v41  ;;  %v242_v61 = vld [vmem:[%s910_s4 + $0x130] sm:$0xff]  ;;  %v209_v0 = vld [vmem:[%s910_s4 + $0x28] sm:$0xff]  ;;  %v256_v3 = vld [vmem:[%s910_s4 + $0x1a0] sm:$0xff] }
  0x17   :  { %530 = vmatprep.subr.mxu0 %v230_v42  ;;  %565 = vmatprep.subr.mxu1 %v262_v43  ;;  %v241_v1 = vld [vmem:[%s910_s4 + $0x128] sm:$0xff]  ;;  %v208_v4 = vld [vmem:[%s910_s4 + $0x20] sm:$0xff]  ;;  %v223_v6 = vld [vmem:[%s910_s4 + $0x98] sm:$0xff] }
  0x18   :  { %531 = vmatpush3.msra.mxu0 %v214_v44  ;;  %566 = vmatpush3.msra.mxu1 %v246_v45  ;;  %v240_v5 = vld [vmem:[%s910_s4 + $0x120] sm:$0xff]  ;;  %v255_v7 = vld [vmem:[%s910_s4 + $0x198] sm:$0xff]  ;;  %v222_v10 = vld [vmem:[%s910_s4 + $0x90] sm:$0xff] }
  0x19   :  { %532 = vmatprep.subr.mxu0 %v229_v46  ;;  %567 = vmatprep.subr.mxu1 %v261_v47  ;;  %v207_v8 = vld [vmem:[%s910_s4 + $0x18] sm:$0xff]  ;;  %v254_v11 = vld [vmem:[%s910_s4 + $0x190] sm:$0xff]  ;;  %v221_v14 = vld [vmem:[%s910_s4 + $0x88] sm:$0xff] }
  0x1a   :  { %533 = vmatpush3.msra.mxu0 %v213_v48  ;;  %568 = vmatpush3.msra.mxu1 %v245_v49  ;;  %v239_v9 = vld [vmem:[%s910_s4 + $0x118] sm:$0xff]  ;;  %v206_v12 = vld [vmem:[%s910_s4 + $0x10] sm:$0xff]  ;;  %v253_v15 = vld [vmem:[%s910_s4 + $0x188] sm:$0xff] }
  0x1b   :  { %534 = vmatprep.subr.mxu0 %v228_v50  ;;  %569 = vmatprep.subr.mxu1 %v260_v51  ;;  %v238_v13 = vld [vmem:[%s910_s4 + $0x110] sm:$0xff]  ;;  %v205_v16 = vld [vmem:[%s910_s4 + $0x8] sm:$0xff]  ;;  %v220_v18 = vld [vmem:[%s910_s4 + $0x80] sm:$0xff] }
  0x1c   :  { %535 = vmatpush3.msra.mxu0 %v212_v52  ;;  %570 = vmatpush3.msra.mxu1 %v244_v53  ;;  %v237_v17 = vld [vmem:[%s910_s4 + $0x108] sm:$0xff]  ;;  %v252_v19 = vld [vmem:[%s910_s4 + $0x180] sm:$0xff] }
  0x1d   :  { %536 = vmatprep.subr.mxu0 %v227_v54  ;;  %571 = vmatprep.subr.mxu1 %v259_v55  ;;  %v204_v20 = vld [vmem:[%s910_s4] sm:$0xff]  ;;  %v411_v33 = vld [vmem:[%s912_s3 + $0x8] sm:$0x3] }
  0x1e   :  { %537 = vmatpush3.msra.mxu0 %v211_v56  ;;  %572 = vmatpush3.msra.mxu1 %v243_v57  ;;  %v236_v21 = vld [vmem:[%s910_s4 + $0x100] sm:$0xff]  ;;  %v409_v41 = vld [vmem:[%s911_s2 + $0x8] sm:$0x3] }
  0x1f   :  { %538 = vmatprep.subr.mxu0 %v226_v58  ;;  %573 = vmatprep.subr.mxu1 %v258_v59  ;;  %v408_v30 = vld [vmem:[%s911_s2] sm:$0xff] }
  0x20   :  { %539 = vmatpush3.msra.mxu0 %v210_v60  ;;  %574 = vmatpush3.msra.mxu1 %v242_v61  ;;  %v410_v32 = vld [vmem:[%s912_s3] sm:$0xff] }
  0x21   :  { %540 = vmatprep.subr.mxu0 %v225_v62  ;;  %575 = vmatprep.subr.mxu1 %v257_v63 }
  0x22   :  { %541 = vmatpush3.msra.mxu0 %v209_v0  ;;  %576 = vmatpush3.msra.mxu1 %v241_v1 }
  0x23   :  { %542 = vmatprep.subr.mxu0 %v224_v2  ;;  %577 = vmatprep.subr.mxu1 %v256_v3 }
  0x24   :  { %543 = vmatpush3.msra.mxu0 %v208_v4  ;;  %578 = vmatpush3.msra.mxu1 %v240_v5 }
  0x25   :  { %544 = vmatprep.subr.mxu0 %v223_v6  ;;  %579 = vmatprep.subr.mxu1 %v255_v7 }
  0x26   :  { %545 = vmatpush3.msra.mxu0 %v207_v8  ;;  %580 = vmatpush3.msra.mxu1 %v239_v9 }
  0x27   :  { %546 = vmatprep.subr.mxu0 %v222_v10  ;;  %581 = vmatprep.subr.mxu1 %v254_v11 }
  0x28   :  { %547 = vmatpush3.msra.mxu0 %v206_v12  ;;  %582 = vmatpush3.msra.mxu1 %v238_v13 }
  0x29   :  { %548 = vmatprep.subr.mxu0 %v221_v14  ;;  %583 = vmatprep.subr.mxu1 %v253_v15 }
  0x2a   :  { %549 = vmatpush3.msra.mxu0 %v205_v16  ;;  %584 = vmatpush3.msra.mxu1 %v237_v17 }
  0x2b   :  { %550 = vmatprep.subr.mxu0 %v220_v18  ;;  %585 = vmatprep.subr.mxu1 %v252_v19 }
  0x2c   :  { %551 = vmatpush3.msra.mxu0 %v204_v20  ;;  %586 = vmatpush3.msra.mxu1 %v236_v21 }
  0x2d   :  { %600 = vset.pattern.permute.xlu0 %v602_v31 }
  0x2e   :  { %414 = vperm.xlu0 %600, %v410_v32  }
  0x32   :  { %419 = vperm.xlu0 %600, %v411_v33  }
  0xa9   :  { %v415_v42 = vpop.permute.xlu0 %414 }
  0xad   :  { %v420_v44 = vpop.permute.xlu0 %419 }
  0xcc   :  { %v124_v22 = vpop.f32.mrf.mxu0  ;;  %v195_v23 = vpop.f32.mrf.mxu1 }
  0xcd   :  { %v200_v28 = vmax.f32 %v124_v22, 0.0  ;;  %v202_v29 = vmax.f32 %v195_v23, 0.0 }
  0xce   :  { %v126_v24 = vpop.f32.mrf.mxu0  ;;  %v197_v25 = vpop.f32.mrf.mxu1 }
  0xcf   :  { %v201_v26 = vmax.f32 %v126_v24, 0.0  ;;  %v203_v27 = vmax.f32 %v197_v25, 0.0 }
  0xd1   :  { %332 = vmatprep.mubr.f32.mxu0 %v201_v26  ;;  %402 = vmatprep.mubr.f32.mxu1 %v203_v27 }
  0xd2   :  { %333 = vmatmul.mubr.f32.vlgmr.msra.gmra.mxu0 %v200_v28  ;;  %403 = vmatmul.mubr.f32.vlgmr.msra.gmra.mxu1 %v202_v29 }
  0xd3   :  { %595 = vmatprep.mubr.msk.f32.mxu0 %vm422_vm2, %v408_v30 }
 0x192   :  { %v552_v34 = vpop.f32.mrf.mxu0  ;;  %v587_v35 = vpop.f32.mrf.mxu1 }
 0x194   :  { %v553_v36 = vpop.f32.mrf.mxu0  ;;  %v588_v37 = vpop.f32.mrf.mxu1 }
 0x195   :  { %v554_v38 = vadd.f32 %v553_v36, %v552_v34  ;;  %v589_v39 = vadd.f32 %v588_v37, %v587_v35 }
 0x197   :  { %v405_v40 = vadd.f32 %v589_v39, %v554_v38 }
 0x199   :  { %593 = vmatprep.subr.mxu0 %v405_v40 }
 0x19a   :  { %594 = vmatpush3.msra.mxu0 %v405_v40 }
 0x19b   :  { %596 = vmatmul.mubr.msk.f32.vlgmr.msra.gmra.mxu0 %vm422_vm2, %v409_v41 }
 0x25b   :  { %v597_v43 = vpop.f32.mrf.mxu0 }
 0x25c   :  { %v501_v45 = vadd.f32 %v597_v43, %v420_v44 }
 0x25d   :  { %v495_v46 = vpop.f32.mrf.mxu0 }
 0x25e   :  { %507 = vst.msk [vmem:[%s913_s5 + $0x8] sm:$0x3] %vm506_vm3, %v501_v45  ;;  %v496_v47 = vadd.f32 %v495_v46, %v415_v42 }
 0x260   :  { %505 = vst.msk [vmem:[%s913_s5] sm:$0xff] %vm504_vm4, %v496_v47 }

</bundles_post_ra>
